<compile_context>
chip_gen: v7x
topology: tpu7x:2x2x1
jax: 0.10.0
libtpu: 0.0.40
codegen_flags: <defaults>
</compile_context>

<pallas_src>
import functools

import jax
import jax.numpy as jnp
from jax import lax
from jax.experimental import pallas as pl
from jax.experimental.pallas import tpu as pltpu


def _round_up(x, m):
    return ((x + m - 1) // m) * m


def _act_classifier_kernel(act_ref, w1_ref, b1_ref, w2_ref, b2_ref, out_ref,
                           x_ref, acc_ref, *,
                           reduce_tokens, inv_t, t_chunks, t_chunk):
    """Grid = (row_tile, hidden_tile).  Hidden axis is the streamed/reduction
    axis: the first matmul is tiled over W1 columns, the second accumulates
    logits over W2 rows into acc_ref."""
    hk = pl.program_id(1)

    # ---- per-row-tile init (first hidden tile only) -------------------------
    @pl.when(hk == 0)
    def _():
        if reduce_tokens:
            # Mean over tokens, accumulated in f32 chunk-by-chunk so we never
            # materialize a full f32 copy of the act block.
            def body(c, acc):
                start = pl.multiple_of(c * t_chunk, t_chunk)
                blk = act_ref[:, pl.ds(start, t_chunk), :].astype(jnp.float32)
                return acc + jnp.sum(blk, axis=1)

            x0 = jnp.zeros(x_ref.shape, jnp.float32)
            x_ref[...] = lax.fori_loop(0, t_chunks, body, x0) * inv_t
        else:
            x_ref[...] = act_ref[...].astype(jnp.float32)
        acc_ref[...] = jnp.zeros_like(acc_ref)

    # ---- Linear(dim -> hidden_tile) + ReLU (bf16 weights, f32 accum) --------
    h = jnp.dot(x_ref[...], w1_ref[...].astype(jnp.float32),
                preferred_element_type=jnp.float32) + b1_ref[...]
    h = jnp.maximum(h, 0.0)

    # ---- Linear(hidden_tile -> classes): accumulate logits over hidden ------
    acc_ref[...] += jnp.dot(h, w2_ref[...].astype(jnp.float32),
                            preferred_element_type=jnp.float32)

    # ---- finalize: bias + numerically-stable softmax -------------------------
    @pl.when(hk == pl.num_programs(1) - 1)
    def _():
        logits = acc_ref[...] + b2_ref[...]          # padded classes get -1e30
        m = jnp.max(logits, axis=-1, keepdims=True)
        e = jnp.exp(logits - m)
        denom = jnp.sum(e, axis=-1, keepdims=True)
        out_ref[...] = e * pl.reciprocal(denom, approx=True)


def act_classifier_forward(act, w1, b1, w2, b2, *, all_layers,
                           weight_dtype=jnp.bfloat16):
    """Fused (mean ->) MLP -> softmax.

    act: [L, T, D] if not all_layers (mean over T in-kernel), else [N, D].
    w1: [D, H], b1: [H], w2: [H, C], b2: [C]   (H = (D + C) // 2)
    Returns float32 [1, rows, C], or [1, C] when (not all_layers) and rows==1
    (matching torch's `.squeeze()` rank change).
    """
    reduce_tokens = not all_layers
    if reduce_tokens:
        assert act.ndim == 3, "expect [layers, tokens, dim] when all_layers=False"
        rows, T, D = act.shape
    else:
        assert act.ndim == 2, "expect [N, dim] when all_layers=True"
        rows, D = act.shape
        T = 1
    H = w1.shape[1]
    C = w2.shape[1]

    # ---- tile / padding choices ---------------------------------------------
    LANE = 128
    TR = 8                                   # row tile (sublane-aligned)
    T_CHUNK = 8                              # token chunk for the f32 mean accum
    Dp = _round_up(D, LANE)
    Cp = _round_up(C, LANE)
    Hp = _round_up(H, LANE)
    TH = Hp if Hp <= 512 else 512            # hidden tile: <=512 cols keeps the
    Hp = _round_up(Hp, TH)                   # double-buffered W1 tile well inside
    Rp = _round_up(rows, TR)                 # v7x's 32 MiB scoped VMEM
    Tp = _round_up(T, T_CHUNK)
    # NOTE: for very large D one would additionally tile the K (=D) axis of W1;
    # not needed at these hidden sizes since H = (D + C) // 2 bounds the tile.

    # ---- pad + cast parameters (done once, outside the kernel) --------------
    # Weights streamed as bf16 (halves the dominant HBM traffic); biases f32,
    # lane-aligned 2-D.  Padded class logits get -1e30 so softmax ignores them.
    w1p = jnp.zeros((Dp, Hp), weight_dtype).at[:D, :H].set(w1.astype(weight_dtype))
    b1p = jnp.zeros((1, Hp), jnp.float32).at[0, :H].set(b1.astype(jnp.float32))
    w2p = jnp.zeros((Hp, Cp), weight_dtype).at[:H, :C].set(w2.astype(weight_dtype))
    b2p = jnp.full((1, Cp), -1e30, jnp.float32).at[0, :C].set(b2.astype(jnp.float32))

    if reduce_tokens:
        actp = jnp.zeros((Rp, Tp, Dp), act.dtype).at[:rows, :T, :D].set(act)
        act_spec = pl.BlockSpec((TR, Tp, Dp), lambda r, h: (r, 0, 0))
    else:
        actp = jnp.zeros((Rp, Dp), act.dtype).at[:rows, :D].set(act)
        act_spec = pl.BlockSpec((TR, Dp), lambda r, h: (r, 0))

    grid = (Rp // TR, Hp // TH)

    kernel = functools.partial(
        _act_classifier_kernel,
        reduce_tokens=reduce_tokens,
        inv_t=1.0 / float(T),
        t_chunks=Tp // T_CHUNK,
        t_chunk=T_CHUNK,
    )

    out = pl.pallas_call(
        kernel,
        out_shape=jax.ShapeDtypeStruct((Rp, Cp), jnp.float32),
        grid_spec=pltpu.PrefetchScalarGridSpec(
            num_scalar_prefetch=0,
            grid=grid,
            in_specs=[
                act_spec,                                           # resident per row tile
                pl.BlockSpec((Dp, TH), lambda r, h: (0, h)),        # W1 col tile (streamed)
                pl.BlockSpec((1, TH), lambda r, h: (0, h)),         # b1 tile
                pl.BlockSpec((TH, Cp), lambda r, h: (h, 0)),        # W2 row tile (streamed)
                pl.BlockSpec((1, Cp), lambda r, h: (0, 0)),         # b2 (resident)
            ],
            out_specs=pl.BlockSpec((TR, Cp), lambda r, h: (r, 0)),  # resident across hk
            scratch_shapes=[
                pltpu.VMEM((TR, Dp), jnp.float32),                  # x = mean(act) / cast
                pltpu.VMEM((TR, Cp), jnp.float32),                  # logits accumulator
            ],
        ),
        compiler_params=pltpu.CompilerParams(
            dimension_semantics=("parallel", "arbitrary"),
        ),
    )(actp, w1p, b1p, w2p, b2p)

    out = out[:rows, :C]
    if reduce_tokens and rows == 1:
        # torch: mean(1).squeeze() drops the layer dim when L == 1
        return out.reshape((1, C))
    # unsqueeze(0) done by the torch code before self.project: pure glue.
    return out.reshape((1, rows, C))


def _init_linear_params(key, fan_in, fan_out):
    # Deterministic init mimicking torch.nn.Linear default (uniform +-1/sqrt(fan_in)).
    kw, kb = jax.random.split(key)
    bound = 1.0 / (fan_in ** 0.5)
    w = jax.random.uniform(kw, (fan_in, fan_out), jnp.float32, -bound, bound)
    b = jax.random.uniform(kb, (fan_out,), jnp.float32, -bound, bound)
    return w, b


if __name__ == "__main__":
    # Small shapes consistent with the module:
    #   dim=32, classes=4 -> hidden=(32+4)//2=18
    #   act: [L=8 layers, T=8 tokens, D=32]
    dim, classes = 32, 4
    hidden = (dim + classes) // 2
    L, T = 8, 8

    key = jax.random.PRNGKey(0)
    k_act, k_l1, k_l2, k_act2 = jax.random.split(key, 4)

    act3d = jax.random.normal(k_act, (L, T, dim), dtype=jnp.float32)
    w1, b1 = _init_linear_params(k_l1, dim, hidden)
    w2, b2 = _init_linear_params(k_l2, hidden, classes)

    # Reference uses the same bf16-rounded weights the kernel streams.
    w1q = w1.astype(jnp.bfloat16).astype(jnp.float32)
    w2q = w2.astype(jnp.bfloat16).astype(jnp.float32)

    def ref_mlp_softmax(x):
        h = jnp.maximum(x @ w1q + b1, 0.0)
        return jax.nn.softmax(h @ w2q + b2, axis=-1)

    # --- all_layers=False: mean over tokens, L > 1 (squeeze is a no-op) ------
    out = jax.block_until_ready(
        act_classifier_forward(act3d, w1, b1, w2, b2, all_layers=False))
    ref = ref_mlp_softmax(jnp.mean(act3d.astype(jnp.float32), axis=1))[None]
    assert out.shape == (1, L, classes), out.shape
    assert jnp.allclose(jnp.sum(out, axis=-1), 1.0, atol=1e-2)
    assert jnp.allclose(out, ref, atol=2e-2), float(jnp.max(jnp.abs(out - ref)))

    # --- all_layers=True: act is [N, D], no token mean ------------------------
    N = 5
    act2d = jax.random.normal(k_act2, (N, dim), dtype=jnp.float32)
    out2 = jax.block_until_ready(
        act_classifier_forward(act2d, w1, b1, w2, b2, all_layers=True))
    ref2 = ref_mlp_softmax(act2d)[None]
    assert out2.shape == (1, N, classes), out2.shape
    assert jnp.allclose(out2, ref2, atol=2e-2), float(jnp.max(jnp.abs(out2 - ref2)))

    # --- all_layers=False with L == 1: torch's .squeeze() drops the layer dim -
    out3 = jax.block_until_ready(
        act_classifier_forward(act3d[:1], w1, b1, w2, b2, all_layers=False))
    ref3 = ref_mlp_softmax(jnp.mean(act3d[:1].astype(jnp.float32), axis=1))
    assert out3.shape == (1, classes), out3.shape
    assert jnp.allclose(out3, ref3, atol=2e-2)

    print("KERNEL_OK")
</pallas_src>

<mosaic_0001>
module attributes {stable_mosaic.version = 11 : i64} {
  func.func @_act_classifier_kernel(%arg0: i32, %arg1: i32, %arg2: memref<8x8x128xf32, #tpu.memory_space<vmem>>, %arg3: memref<128x128xbf16, #tpu.memory_space<vmem>>, %arg4: memref<1x128xf32, #tpu.memory_space<vmem>>, %arg5: memref<128x128xbf16, #tpu.memory_space<vmem>>, %arg6: memref<1x128xf32, #tpu.memory_space<vmem>>, %arg7: memref<8x128xf32, #tpu.memory_space<vmem>>, %arg8: memref<8x128xf32, #tpu.memory_space<vmem>>, %arg9: memref<8x128xf32, #tpu.memory_space<vmem>>) attributes {dimension_semantics = [#tpu.dimension_semantics<parallel>, #tpu.dimension_semantics<arbitrary>], iteration_bounds = array<i64: 1, 1>, scalar_prefetch = 0 : i64, scratch_operands = 2 : i64, tpu.core_type = #tpu.core_type<tc>, window_params = [{transform_indices = @transform_0, window_bounds = array<i64: 8, 8, 128>}, {transform_indices = @transform_1, window_bounds = array<i64: 128, 128>}, {transform_indices = @transform_2, window_bounds = array<i64: 1, 128>}, {transform_indices = @transform_3, window_bounds = array<i64: 128, 128>}, {pipeline_mode = #tpu.pipeline_mode<synchronous>, transform_indices = @transform_4, window_bounds = array<i64: 1, 128>}, {transform_indices = @transform_5, window_bounds = array<i64: 8, 128>}]} {
    %c0_i32 = arith.constant 0 : i32
    %0 = arith.cmpi eq, %arg1, %c0_i32 : i32
    %1 = arith.extui %0 : i1 to i32
    %c0_i32_0 = arith.constant 0 : i32
    %2 = arith.cmpi ne, %1, %c0_i32_0 : i32
    scf.if %2 {
      %cst_16 = arith.constant 0.000000e+00 : f32
      %21 = vector.broadcast %cst_16 : f32 to vector<8x128xf32>
      %c0_i32_17 = arith.constant 0 : i32
      %c8_i32 = arith.constant 8 : i32
      %22 = arith.muli %c0_i32_17, %c8_i32 : i32
      %23 = tpu.assume_multiple %22, 8 : i32
      %c0_18 = arith.constant 0 : index
      %24 = arith.index_cast %23 : i32 to index
      %c0_19 = arith.constant 0 : index
      %25 = vector.load %arg2[%c0_18, %24, %c0_19] : memref<8x8x128xf32, #tpu.memory_space<vmem>>, vector<8x8x128xf32>
      %cst_20 = arith.constant dense<0.000000e+00> : vector<8x128xf32>
      %26 = vector.multi_reduction <add>, %25, %cst_20 [1] : vector<8x8x128xf32> to vector<8x128xf32>
      %27 = arith.addf %21, %26 : vector<8x128xf32>
      %c1_i32 = arith.constant 1 : i32
      %cst_21 = arith.constant 1.250000e-01 : f32
      %28 = vector.broadcast %cst_21 : f32 to vector<8x128xf32>
      %29 = arith.mulf %27, %28 : vector<8x128xf32>
      %c0_22 = arith.constant 0 : index
      %c0_23 = arith.constant 0 : index
      %30 = vector.load %arg8[%c0_22, %c0_23] : memref<8x128xf32, #tpu.memory_space<vmem>>, vector<8x128xf32>
      tpu.vector_store %arg8[%c0_22, %c0_23], %29 {strides = array<i32>} : memref<8x128xf32, #tpu.memory_space<vmem>>, vector<8x128xf32>,
      %cst_24 = arith.constant 0.000000e+00 : f32
      %31 = vector.broadcast %cst_24 : f32 to vector<8x128xf32>
      %c0_25 = arith.constant 0 : index
      %c0_26 = arith.constant 0 : index
      %32 = vector.load %arg9[%c0_25, %c0_26] : memref<8x128xf32, #tpu.memory_space<vmem>>, vector<8x128xf32>
      tpu.vector_store %arg9[%c0_25, %c0_26], %31 {strides = array<i32>} : memref<8x128xf32, #tpu.memory_space<vmem>>, vector<8x128xf32>,
    } else {
    }
    %c0 = arith.constant 0 : index
    %c0_1 = arith.constant 0 : index
    %3 = vector.load %arg8[%c0, %c0_1] : memref<8x128xf32, #tpu.memory_space<vmem>>, vector<8x128xf32>
    %c0_2 = arith.constant 0 : index
    %c0_3 = arith.constant 0 : index
    %4 = vector.load %arg3[%c0_2, %c0_3] : memref<128x128xbf16, #tpu.memory_space<vmem>>, vector<128x128xbf16>
    %5 = arith.extf %4 : vector<128x128xbf16> to vector<128x128xf32>
    %cst = arith.constant dense<0.000000e+00> : vector<8x128xf32>
    %6 = tpu.matmul %3, %5, %cst {dimension_numbers = #tpu.dot_dimension_numbers<[1], [0], [0], [1], [0, 0, 1, 1], [], []>} : vector<8x128xf32>, vector<128x128xf32>, vector<8x128xf32> -> vector<8x128xf32>
    %c0_4 = arith.constant 0 : index
    %c0_5 = arith.constant 0 : index
    %7 = vector.load %arg4[%c0_4, %c0_5] : memref<1x128xf32, #tpu.memory_space<vmem>>, vector<1x128xf32>
    %8 = vector.broadcast %7 : vector<1x128xf32> to vector<8x128xf32>
    %9 = arith.addf %6, %8 : vector<8x128xf32>
    %cst_6 = arith.constant 0.000000e+00 : f32
    %10 = vector.broadcast %cst_6 : f32 to vector<8x128xf32>
    %11 = arith.maximumf %9, %10 : vector<8x128xf32>
    %c0_7 = arith.constant 0 : index
    %c0_8 = arith.constant 0 : index
    %12 = vector.load %arg9[%c0_7, %c0_8] : memref<8x128xf32, #tpu.memory_space<vmem>>, vector<8x128xf32>
    %c0_9 = arith.constant 0 : index
    %c0_10 = arith.constant 0 : index
    %13 = vector.load %arg5[%c0_9, %c0_10] : memref<128x128xbf16, #tpu.memory_space<vmem>>, vector<128x128xbf16>
    %14 = arith.extf %13 : vector<128x128xbf16> to vector<128x128xf32>
    %cst_11 = arith.constant dense<0.000000e+00> : vector<8x128xf32>
    %15 = tpu.matmul %11, %14, %cst_11 {dimension_numbers = #tpu.dot_dimension_numbers<[1], [0], [0], [1], [0, 0, 1, 1], [], []>} : vector<8x128xf32>, vector<128x128xf32>, vector<8x128xf32> -> vector<8x128xf32>
    %16 = arith.addf %12, %15 : vector<8x128xf32>
    %c0_12 = arith.constant 0 : index
    %c0_13 = arith.constant 0 : index
    %17 = vector.load %arg9[%c0_12, %c0_13] : memref<8x128xf32, #tpu.memory_space<vmem>>, vector<8x128xf32>
    tpu.vector_store %arg9[%c0_12, %c0_13], %16 {strides = array<i32>} : memref<8x128xf32, #tpu.memory_space<vmem>>, vector<8x128xf32>,
    %c0_i32_14 = arith.constant 0 : i32
    %18 = arith.cmpi eq, %arg1, %c0_i32_14 : i32
    %19 = arith.extui %18 : i1 to i32
    %c0_i32_15 = arith.constant 0 : i32
    %20 = arith.cmpi ne, %19, %c0_i32_15 : i32
    scf.if %20 {
      %c0_16 = arith.constant 0 : index
      %c0_17 = arith.constant 0 : index
      %21 = vector.load %arg9[%c0_16, %c0_17] : memref<8x128xf32, #tpu.memory_space<vmem>>, vector<8x128xf32>
      %c0_18 = arith.constant 0 : index
      %c0_19 = arith.constant 0 : index
      %22 = vector.load %arg6[%c0_18, %c0_19] : memref<1x128xf32, #tpu.memory_space<vmem>>, vector<1x128xf32>
      %23 = vector.broadcast %22 : vector<1x128xf32> to vector<8x128xf32>
      %24 = arith.addf %21, %23 : vector<8x128xf32>
      %cst_20 = arith.constant dense<0xFF800000> : vector<8xf32>
      %25 = vector.multi_reduction <maximumf>, %24, %cst_20 [1] : vector<8x128xf32> to vector<8xf32>
      %26 = vector.shape_cast %25 : vector<8xf32> to vector<8x1xf32>
      %27 = vector.broadcast %26 : vector<8x1xf32> to vector<8x128xf32>
      %28 = arith.subf %24, %27 : vector<8x128xf32>
      %29 = math.exp %28 : vector<8x128xf32>
      %cst_21 = arith.constant dense<0.000000e+00> : vector<8xf32>
      %30 = vector.multi_reduction <add>, %29, %cst_21 [1] : vector<8x128xf32> to vector<8xf32>
      %31 = vector.shape_cast %30 : vector<8xf32> to vector<8x1xf32>
      %32 = tpu.reciprocal %31 {approx = true} : vector<8x1xf32> -> vector<8x1xf32>
      %33 = vector.broadcast %32 : vector<8x1xf32> to vector<8x128xf32>
      %34 = arith.mulf %29, %33 : vector<8x128xf32>
      %c0_22 = arith.constant 0 : index
      %c0_23 = arith.constant 0 : index
      %35 = vector.load %arg7[%c0_22, %c0_23] : memref<8x128xf32, #tpu.memory_space<vmem>>, vector<8x128xf32>
      tpu.vector_store %arg7[%c0_22, %c0_23], %34 {strides = array<i32>} : memref<8x128xf32, #tpu.memory_space<vmem>>, vector<8x128xf32>,
    } else {
    }
    return
  }
  func.func @transform_0(%arg0: i32, %arg1: i32) -> (i32, i32, i32) {
    %c0_i32 = arith.constant 0 : i32
    %c0_i32_0 = arith.constant 0 : i32
    %c0_i32_1 = arith.constant 0 : i32
    return %arg0, %c0_i32, %c0_i32_0 : i32, i32, i32
  }
  func.func @transform_1(%arg0: i32, %arg1: i32) -> (i32, i32) {
    %c0_i32 = arith.constant 0 : i32
    %c0_i32_0 = arith.constant 0 : i32
    return %c0_i32, %arg1 : i32, i32
  }
  func.func @transform_2(%arg0: i32, %arg1: i32) -> (i32, i32) {
    %c0_i32 = arith.constant 0 : i32
    %c0_i32_0 = arith.constant 0 : i32
    return %c0_i32, %arg1 : i32, i32
  }
  func.func @transform_3(%arg0: i32, %arg1: i32) -> (i32, i32) {
    %c0_i32 = arith.constant 0 : i32
    %c0_i32_0 = arith.constant 0 : i32
    return %arg1, %c0_i32 : i32, i32
  }
  func.func @transform_4(%arg0: i32, %arg1: i32) -> (i32, i32) {
    %c0_i32 = arith.constant 0 : i32
    %c0_i32_0 = arith.constant 0 : i32
    %c0_i32_1 = arith.constant 0 : i32
    return %c0_i32, %c0_i32_0 : i32, i32
  }
  func.func @transform_5(%arg0: i32, %arg1: i32) -> (i32, i32) {
    %c0_i32 = arith.constant 0 : i32
    %c0_i32_0 = arith.constant 0 : i32
    return %arg0, %c0_i32 : i32, i32
  }
}

</mosaic_0001>

<bundles_post_ra>
// kernel: tpu_custom_call.1
= control target key start
LH: loop header
LB: loop body
LE: loop exit
PB: predicated region body
PF: predicated region fallthrough
CT: control target
= control target key end

     0   :  { %10 = vsyncpa [#allocation5], 0  ;;  %s875_s0 = inlined_call_operand.hbm [shape: f32[8,8,128], index: 0, kind: input, shape index: {}]   ;;  %s876_s1 = inlined_call_operand.hbm [shape: bf16[128,128], index: 1, kind: input, shape index: {}]   ;;  %s877_s2 = inlined_call_operand.vmem [shape: f32[1,128], index: 2, kind: input, shape index: {}]   ;;  %s878_s3 = inlined_call_operand.hbm [shape: bf16[128,128], index: 3, kind: input, shape index: {}]   ;;  %s879_s4 = inlined_call_operand.vmem [shape: f32[1,128], index: 4, kind: input, shape index: {}]   ;;  %s880_s5 = inlined_call_operand.hbm [shape: f32[8,128], index: 5, kind: output, shape index: {}]  }
   0x1   :  { %11 = vsyncpa [#allocation8], 0 }
   0x2   :  { %12 = vsyncpa [#allocation6], 0  ;;  %s758_s18 = smov [#allocation7]   ;;  %s664_s22 = scalar_lea.hbm %s876_s1, 1024 }
   0x3   :  { %s30_s19 = sshll.u32 %s758_s18, 4  ;;  %p665_p0 = scmp.ne.s32.totalorder %s876_s1, %s664_s22  ;;  %s31_s19 = int_to_ptr.vmem [resolvable:$true] %s30_s19 }
   0x4   :  { %p668_p1 = scmp.lt.u32.totalorder %s664_s22, %s876_s1 }
   0x6   :  { %p670_p2 = pnand %p668_p1, %p665_p0 }
   0x8   :  { %673 = shalt.err (!%p670_p2)
}
   0x9   :  { %s674_s27 = scalar_lea.vmem %s31_s19, 1024  ;;  %p679_p4 = scmp.lt.s32.totalorder %s31_s19, %s31_s19 }
   0xa   :  { %p675_p3 = scmp.ne.s32.totalorder %s31_s19, %s674_s27  ;;  %p680_p5 = scmp.lt.s32.totalorder %s674_s27, %s674_s27 }
   0xc   :  { %p681_p6 = por %p680_p5, %p679_p4 }
   0xe   :  { %p682_p7 = pnand %p681_p6, %p675_p3 }
  0x10   :  { %685 = shalt.err (!%p682_p7)
}
  0x11   :  { %s759_s28 = smov 64   ;;  %s760_s29 = smov 4  }
  0x12   :  { %36 = dma.hbm_to_vmem [thread:$0]  %s876_s1, 1024, %s31_s19, [#allocation8], %s759_s28, %s759_s28, %s760_s29  }
  0x13   :  { %s761_s7 = smov [#allocation4]   ;;  %s686_s11 = scalar_lea.hbm %s875_s0, 1024 }
  0x14   :  { %s18_s8 = sshll.u32 %s761_s7, 4  ;;  %p687_p8 = scmp.ne.s32.totalorder %s875_s0, %s686_s11  ;;  %s19_s8 = int_to_ptr.vmem [resolvable:$true] %s18_s8 }
  0x15   :  { %p690_p9 = scmp.lt.u32.totalorder %s686_s11, %s875_s0 }
  0x17   :  { %p692_p10 = pnand %p690_p9, %p687_p8 }
  0x19   :  { %695 = shalt.err (!%p692_p10)
}
  0x1a   :  { %s696_s16 = scalar_lea.vmem %s19_s8, 1024  ;;  %p701_p12 = scmp.lt.s32.totalorder %s19_s8, %s19_s8 }
  0x1b   :  { %p697_p11 = scmp.ne.s32.totalorder %s19_s8, %s696_s16  ;;  %p702_p13 = scmp.lt.s32.totalorder %s696_s16, %s696_s16 }
  0x1d   :  { %p703_p0 = por %p702_p13, %p701_p12 }
  0x1f   :  { %p704_p1 = pnand %p703_p0, %p697_p11 }
  0x21   :  { %707 = shalt.err (!%p704_p1)
}
  0x22   :  { %s762_s1 = smov 128   ;;  %s763_s17 = smov 8  }
  0x23   :  { %24 = dma.hbm_to_vmem [thread:$0]  %s875_s0, 1024, %s19_s8, [#allocation5], %s762_s1, %s762_s1, %s763_s17  }
  0x24   :  { %s764_s20 = smov [#allocation9]   ;;  %s708_s24 = scalar_lea.hbm %s878_s3, 1024 }
  0x25   :  { %s44_s21 = sshll.u32 %s764_s20, 4  ;;  %p709_p2 = scmp.ne.s32.totalorder %s878_s3, %s708_s24  ;;  %s45_s21 = int_to_ptr.vmem [resolvable:$true] %s44_s21 }
  0x26   :  { %p712_p3 = scmp.lt.u32.totalorder %s708_s24, %s878_s3 }
  0x28   :  { %p714_p4 = pnand %p712_p3, %p709_p2 }
  0x2a   :  { %717 = shalt.err (!%p714_p4)
}
  0x2b   :  { %s718_s6 = scalar_lea.vmem %s45_s21, 1024  ;;  %p723_p6 = scmp.lt.s32.totalorder %s45_s21, %s45_s21 }
  0x2c   :  { %p719_p5 = scmp.ne.s32.totalorder %s45_s21, %s718_s6  ;;  %p724_p7 = scmp.lt.s32.totalorder %s718_s6, %s718_s6 }
  0x2e   :  { %p725_p8 = por %p724_p7, %p723_p6 }
  0x30   :  { %p726_p9 = pnand %p725_p8, %p719_p5 }
  0x32   :  { %729 = shalt.err (!%p726_p9)
}
  0x33   :  { %50 = dma.hbm_to_vmem [thread:$0]  %s878_s3, 1024, %s45_s21, [#allocation8], %s759_s28, %s759_s28, %s760_s29  }
  0x34   :  { %752 = dma.done.wait [#allocation5], 1024  }
  0x35   :  { %753 = vsyncadd [#allocation5], 4294966272 }
  0x36   :  { %754 = dma.done.wait [#allocation8], 2048  }
  0x37   :  { %755 = vsyncadd [#allocation8], 4294965248  ;;  %v765_v0 = vmov 0.0|0.0   ;;  %vm766_vm0 = vmmov 0   ;;  %v767_v1 = vmov 0.0   ;;  %v420_v2 = vld [vmem:[#allocation7] sm:$0xff]  }
  0x38   :  { %601 = vmatprep.subr.bf16.mxu0 %v765_v0  ;;  %563 = vmatprep.mubr.msk.f32.mxu0 %vm766_vm0, %v767_v1  ;;  %v483_v3 = vld [vmem:[#allocation7 + $0x8] sm:$0xff]   ;;  %v66_v4 = vld [vmem:[#allocation4] sm:$0xff]  ;;  %v68_v6 = vld [vmem:[#allocation4 + $0x10] sm:$0xff]  ;;  %vm146_vm1 = vcmask 1041409   ;;  %vm148_vm2 = vcmask 1042434   ;;  %vm150_vm3 = vcmask 1043459  }
  0x39   :  { %625 = vmatprep.subr.bf16.mxu1 %v765_v0  ;;  %598 = vmatprep.mubr.msk.f32.mxu1 %vm766_vm0, %v767_v1  ;;  %v67_v5 = vld [vmem:[#allocation4 + $0x8] sm:$0xff]  ;;  %v69_v7 = vld [vmem:[#allocation4 + $0x18] sm:$0xff]  ;;  %v74_v8 = vrot.slane %v66_v4, 4  ;;  %v70_v9 = vld [vmem:[#allocation4 + $0x20] sm:$0xff]  ;;  %v86_v13 = vrot.slane %v68_v6, 4  ;;  %vm152_vm4 = vcmask 1044484  }
  0x3a   :  { %603 = vmatpush3.bf16.msra.mxu0 %v420_v2  ;;  %v71_v10 = vld [vmem:[#allocation4 + $0x28] sm:$0xff]  ;;  %v72_v11 = vld [vmem:[#allocation4 + $0x30] sm:$0xff]  ;;  %v80_v12 = vrot.slane %v67_v5, 4  ;;  %v92_v14 = vrot.slane %v69_v7, 4  ;;  %v73_v15 = vld [vmem:[#allocation4 + $0x38] sm:$0xff]  ;;  %v98_v17 = vrot.slane %v70_v9, 4 }
  0x3b   :  { %604 = vmatprep.subr.bf16.mxu0 %v765_v0  ;;  %v75_v16 = vadd.f32 %v74_v8, %v66_v4  ;;  %v104_v18 = vrot.slane %v71_v10, 4  ;;  %v110_v19 = vrot.slane %v72_v11, 4  ;;  %v452_v20 = vld [vmem:[#allocation9] sm:$0xff]   ;;  %v484_v21 = vld [vmem:[#allocation7 + $0x10] sm:$0xff]   ;;  %v87_v23 = vadd.f32 %v86_v13, %v68_v6  ;;  %v490_v30 = vld [vmem:[#allocation9 + $0x8] sm:$0xff]  }
  0x3c   :  { %v81_v22 = vadd.f32 %v80_v12, %v67_v5  ;;  %v93_v24 = vadd.f32 %v92_v14, %v69_v7  ;;  %v116_v25 = vrot.slane %v73_v15, 4  ;;  %627 = vmatpush3.bf16.msra.mxu1 %v452_v20  ;;  %v99_v27 = vadd.f32 %v98_v17, %v70_v9  ;;  %v485_v39 = vld [vmem:[#allocation7 + $0x18] sm:$0xff]   ;;  %v491_v48 = vld [vmem:[#allocation9 + $0x10] sm:$0xff]   ;;  %v486_v56 = vld [vmem:[#allocation7 + $0x20] sm:$0xff]  }
  0x3d   :  { %v76_v26 = vrot.slane %v75_v16, 2  ;;  %v105_v28 = vadd.f32 %v104_v18, %v71_v10  ;;  %v111_v29 = vadd.f32 %v110_v19, %v72_v11  ;;  %628 = vmatprep.subr.bf16.mxu1 %v765_v0  ;;  %v88_v32 = vrot.slane %v87_v23, 2  ;;  %v492_v1 = vld [vmem:[#allocation9 + $0x18] sm:$0xff]   ;;  %v487_v7 = vld [vmem:[#allocation7 + $0x28] sm:$0xff]   ;;  %v493_v12 = vld [vmem:[#allocation9 + $0x20] sm:$0xff]  }
  0x3e   :  { %606 = vmatpush3.bf16.msra.mxu0 %v483_v3  ;;  %v82_v31 = vrot.slane %v81_v22, 2  ;;  %v94_v33 = vrot.slane %v93_v24, 2  ;;  %v117_v34 = vadd.f32 %v116_v25, %v73_v15  ;;  %v100_v36 = vrot.slane %v99_v27, 2  ;;  %v494_v19 = vld [vmem:[#allocation9 + $0x28] sm:$0xff]   ;;  %v496_v25 = vld [vmem:[#allocation9 + $0x38] sm:$0xff]  }
  0x3f   :  { %607 = vmatprep.subr.bf16.mxu0 %v765_v0  ;;  %v77_v35 = vadd.f32 %v76_v26, %v75_v16  ;;  %v106_v37 = vrot.slane %v105_v28, 2  ;;  %v112_v38 = vrot.slane %v111_v29, 2  ;;  %v89_v41 = vadd.f32 %v88_v32, %v87_v23  ;;  %v488_v16 = vld [vmem:[#allocation7 + $0x30] sm:$0xff]   ;;  %v417_v26 = vld [vmem:[%s877_s2] ss:$0 sm:$0xff]  ;;  %s768_s2 = smov [#allocation10]  }
  0x40   :  { %v83_v40 = vadd.f32 %v82_v31, %v81_v22  ;;  %v95_v42 = vadd.f32 %v94_v33, %v93_v24  ;;  %v118_v43 = vrot.slane %v117_v34, 2  ;;  %630 = vmatpush3.bf16.msra.mxu1 %v490_v30  ;;  %v101_v45 = vadd.f32 %v100_v36, %v99_v27  ;;  %v495_v23 = vld [vmem:[#allocation9 + $0x30] sm:$0xff]   ;;  %v418_v31 = vld [vmem:[%s879_s4] ss:$0 sm:$0xff]  ;;  %s407_s9 = sshll.u32 %s768_s2, 4  ;;  %s408_s9 = int_to_ptr.vmem [resolvable:$true] %s407_s9 }
  0x41   :  { %v78_v44 = vrot.slane %v77_v35, 1  ;;  %v107_v46 = vadd.f32 %v106_v37, %v105_v28  ;;  %v113_v47 = vadd.f32 %v112_v38, %v111_v29  ;;  %631 = vmatprep.subr.bf16.mxu1 %v765_v0  ;;  %v90_v50 = vrot.slane %v89_v41, 1  ;;  %s730_s10 = scalar_lea.vmem %s408_s9, 128  ;;  %p735_p11 = scmp.lt.s32.totalorder %s408_s9, %s408_s9 }
  0x42   :  { %609 = vmatpush3.bf16.msra.mxu0 %v484_v21  ;;  %v84_v49 = vrot.slane %v83_v40, 1  ;;  %v96_v51 = vrot.slane %v95_v42, 1  ;;  %v102_v53 = vrot.slane %v101_v45, 1  ;;  %v119_v55 = vadd.f32 %v118_v43, %v117_v34  ;;  %v489_v21 = vld [vmem:[#allocation7 + $0x38] sm:$0xff]   ;;  %p731_p10 = scmp.ne.s32.totalorder %s408_s9, %s730_s10  ;;  %p736_p12 = scmp.lt.s32.totalorder %s730_s10, %s730_s10 }
  0x43   :  { %610 = vmatprep.subr.bf16.mxu0 %v765_v0  ;;  %v79_v52 = vadd.f32 %v78_v44, %v77_v35  ;;  %v108_v54 = vrot.slane %v107_v46, 1  ;;  %v91_v58 = vadd.f32 %v90_v50, %v89_v41  ;;  %v114_v60 = vrot.slane %v113_v47, 1 }
  0x44   :  { %v85_v57 = vadd.f32 %v84_v49, %v83_v40  ;;  %v97_v59 = vadd.f32 %v96_v51, %v95_v42  ;;  %633 = vmatpush3.bf16.msra.mxu1 %v491_v48  ;;  %v103_v61 = vadd.f32 %v102_v53, %v101_v45  ;;  %v120_v5 = vrot.slane %v119_v55, 1  ;;  %p737_p13 = por %p736_p12, %p735_p11 }
  0x45   :  { %v109_v62 = vadd.f32 %v108_v54, %v107_v46  ;;  %v130_v63 = vmul.f32 0.125, %v79_v52  ;;  %634 = vmatprep.subr.bf16.mxu1 %v765_v0  ;;  %v132_v3 = vmul.f32 0.125, %v91_v58  ;;  %v115_v8 = vadd.f32 %v114_v60, %v113_v47 }
  0x46   :  { %612 = vmatpush3.bf16.msra.mxu0 %v485_v39  ;;  %v131_v2 = vmul.f32 0.125, %v85_v57  ;;  %v133_v4 = vmul.f32 0.125, %v97_v59  ;;  %v134_v6 = vmul.f32 0.125, %v103_v61  ;;  %vm154_vm5 = vcmask 1045509   ;;  %p738_p0 = pnand %p737_p13, %p731_p10 }
  0x47   :  { %613 = vmatprep.subr.bf16.mxu0 %v765_v0  ;;  %v135_v10 = vmul.f32 0.125, %v109_v62  ;;  %v121_v14 = vadd.f32 %v120_v5, %v119_v55  ;;  %v136_v17 = vmul.f32 0.125, %v115_v8  ;;  %vm156_vm6 = vcmask 1046534  }
  0x48   :  { %v147_v9 = vsel %vm146_vm1, %v131_v2, %v130_v63  ;;  %636 = vmatpush3.bf16.msra.mxu1 %v492_v1  ;;  %vm158_vm7 = vcmask 1047559  }
  0x49   :  { %v149_v11 = vsel %vm148_vm2, %v132_v3, %v147_v9  ;;  %637 = vmatprep.subr.bf16.mxu1 %v765_v0  ;;  %v137_v20 = vmul.f32 0.125, %v121_v14 }
  0x4a   :  { %615 = vmatpush3.bf16.msra.mxu0 %v486_v56  ;;  %v151_v13 = vsel %vm150_vm3, %v133_v4, %v149_v11 }
  0x4b   :  { %616 = vmatprep.subr.bf16.mxu0 %v765_v0  ;;  %v153_v15 = vsel %vm152_vm4, %v134_v6, %v151_v13 }
  0x4c   :  { %639 = vmatpush3.bf16.msra.mxu1 %v493_v12  ;;  %v155_v18 = vsel %vm154_vm5, %v135_v10, %v153_v15 }
  0x4d   :  { %640 = vmatprep.subr.bf16.mxu1 %v765_v0  ;;  %v157_v22 = vsel %vm156_vm6, %v136_v17, %v155_v18 }
  0x4e   :  { %618 = vmatpush3.bf16.msra.mxu0 %v487_v7  ;;  %v159_v24 = vsel %vm158_vm7, %v137_v20, %v157_v22 }
  0x4f   :  { %619 = vmatprep.subr.bf16.mxu0 %v765_v0 }
  0x50   :  { %642 = vmatpush3.bf16.msra.mxu1 %v494_v19 }
  0x51   :  { %643 = vmatprep.subr.bf16.mxu1 %v765_v0 }
  0x52   :  { %621 = vmatpush3.bf16.msra.mxu0 %v488_v16 }
  0x53   :  { %622 = vmatprep.subr.bf16.mxu0 %v765_v0 }
  0x54   :  { %645 = vmatpush3.bf16.msra.mxu1 %v495_v23 }
  0x55   :  { %646 = vmatprep.subr.bf16.mxu1 %v765_v0 }
  0x56   :  { %624 = vmatpush3.bf16.msra.mxu0 %v489_v21 }
  0x58   :  { %648 = vmatpush3.bf16.msra.mxu1 %v496_v25 }
  0x59   :  { %564 = vmatmul.mubr.f32.vlgmr.msra.gmra.mrb[0].mxu0 %v159_v24 }
 0x12c   :  { %v269_v27 = vpop.f32.mrb[0].mxu0 }
 0x12d   :  { %v270_v28 = vadd.f32 %v417_v26, %v269_v27  ;;  %v565_v29 = vpop.f32.mrb[1].mxu0 }
 0x12f   :  { %v273_v30 = vmax.f32 %v270_v28, 0.0 }
 0x131   :  { %599 = vmatmul.mubr.f32.vlgmr.msra.gmra.mrb[0].mxu1 %v273_v30 }
 0x204   :  { %v373_v32 = vpop.f32.mrb[0].mxu1 }
 0x205   :  { %v390_v33 = vadd.f32 %v418_v31, %v373_v32  ;;  %v600_v34 = vpop.f32.mrb[1].mxu1 }
 0x207   :  { %391 = vmax.xlane.f32.xlu0 %v390_v33 }
 0x294   :  { %v392_v0 = vpop.xlane.xlu0 %391 }
 0x295   :  { %v393_v35 = vsub.f32 %v390_v33, %v392_v0 }
 0x297   :  { %v394_v36 = vmul.f32 1.442695, %v393_v35 }
 0x299   :  { %660 = vpow2.f32 %v394_v36 }
 0x2a3   :  { %v661_v37 = vpop.eup %660 }
 0x2a4   :  { %396 = vadd.xlane.f32.xlu0 %v661_v37 }
 0x331   :  { %v397_v38 = vpop.xlane.xlu0 %396 }
 0x332   :  { %662 = vrcp.f32 %v397_v38 }
 0x33c   :  { %v663_v39 = vpop.eup %662 }
 0x33d   :  { %v399_v40 = vmul.f32 %v663_v39, %v661_v37 }
 0x33f   :  { %400 = vst [vmem:[#allocation10] sm:$0xff] %v399_v40 }
 0x340   :  { %741 = shalt.err (!%p738_p0)
}
 0x341   :  { %s742_s12 = scalar_lea.hbm %s880_s5, 128 }
 0x342   :  { %p743_p1 = scmp.ne.s32.totalorder %s880_s5, %s742_s12  ;;  %p746_p2 = scmp.lt.u32.totalorder %s742_s12, %s880_s5 }
 0x344   :  { %p748_p3 = pnand %p746_p2, %p743_p1 }
 0x346   :  { %751 = shalt.err (!%p748_p3)
}
 0x347   :  { %410 = dma.vmem_to_hbm [thread:$0]  %s408_s9, 128, %s880_s5, [#allocation6]  }
 0x348   :  { %756 = dma.done.wait [#allocation6], 128  }
 0x349   :  { %757 = vsyncadd [#allocation6], 4294967168 }
 0x34a   :  { %414 = vsyncpa [#allocation5], 1 }
 0x34b   :  { %415 = vsyncpa [#allocation8], 1 }
 0x34c   :  { %416 = vsyncpa [#allocation6], 1 }

</bundles_post_ra>
